<compile_context>
chip_gen: v7x
topology: tpu7x:2x2x1
jax: 0.10.0
libtpu: 0.0.40
codegen_flags: <defaults>
</compile_context>

<pallas_src>
import jax
import jax.numpy as jnp
from jax.experimental import pallas as pl
from jax.experimental.pallas import tpu as pltpu


def _round_up(n, m):
    return ((n + m - 1) // m) * m


def _vae_kernel(x_ref, eps_ref,
                w1_ref, b1_ref,
                wms_ref, bms_ref,
                w3_ref, b3_ref,
                w4_ref, b4_ref,
                lat_ref, rec_ref, mean_ref, std_ref):
    """One batch tile of the MyVAE forward pass.

    Weights are pre-transposed to (in_f, out_f); the mean/std heads are fused
    along the last dim of wms/bms ([mean | std]).  Matmuls accumulate in f32
    on the MXU; activations / exp / tanh / reparametrization stay in f32.
    """
    cdt = w1_ref.dtype               # matmul weight dtype (f32 or bf16)
    d2 = mean_ref.shape[-1]          # real latent width (no padding anywhere)

    def dense(a, w_ref, b_ref):
        # Skip the cast entirely on the pure-f32 path (v5e-friendly).
        a = a if a.dtype == cdt else a.astype(cdt)
        return jnp.dot(a, w_ref[...],
                       preferred_element_type=jnp.float32) + b_ref[...]

    # encoder: conv1 = Linear(d0, d1) + ReLU
    h1 = jnp.maximum(dense(x_ref[...], w1_ref, b1_ref), 0.0)

    # fused conv2_mean / conv2_std: one Linear(d1, 2*d2), static lane split
    h2 = dense(h1, wms_ref, bms_ref)
    h2_mean = h2[:, :d2]
    h2_std = h2[:, d2:]

    # reparametrization: eps * exp(std) + mean   (eps ~ U[0,1), torch.rand_like)
    latent = eps_ref[...] * jnp.exp(h2_std) + h2_mean

    # decoder: conv3 = Linear(d2, d3) + ReLU ; conv4 = Linear(d3, d4) + Tanh
    h3 = jnp.maximum(dense(latent, w3_ref, b3_ref), 0.0)
    rec = jnp.tanh(dense(h3, w4_ref, b4_ref))

    lat_ref[...] = latent.astype(lat_ref.dtype)
    rec_ref[...] = rec.astype(rec_ref.dtype)
    mean_ref[...] = h2_mean.astype(mean_ref.dtype)
    std_ref[...] = h2_std.astype(std_ref.dtype)


def prepare_params(raw, compute_dtype=jnp.float32):
    """One-time parameter prep (call OUTSIDE the hot path).

    - transposes PyTorch (out_f, in_f) weights to (in_f, out_f)
    - fuses the mean/std heads into one (d1, 2*d2) weight / (1, 2*d2) bias
    - optionally casts matmul weights to bf16 (biases stay f32); keep f32 on
      v5e (its VPU/EUP have no bf16 path, so the casts would only add work).
    No feature-dim padding: all shapes are the module's real shapes.
    """
    w1 = jnp.asarray(raw["w1"], jnp.float32).T            # (d0, d1)
    wm = jnp.asarray(raw["wm"], jnp.float32).T            # (d1, d2)
    ws = jnp.asarray(raw["ws"], jnp.float32).T            # (d1, d2)
    w3 = jnp.asarray(raw["w3"], jnp.float32).T            # (d2, d3)
    w4 = jnp.asarray(raw["w4"], jnp.float32).T            # (d3, d4)
    b1 = jnp.asarray(raw["b1"], jnp.float32).reshape(1, -1)
    bm = jnp.asarray(raw["bm"], jnp.float32).reshape(1, -1)
    bs = jnp.asarray(raw["bs"], jnp.float32).reshape(1, -1)
    b3 = jnp.asarray(raw["b3"], jnp.float32).reshape(1, -1)
    b4 = jnp.asarray(raw["b4"], jnp.float32).reshape(1, -1)

    wms = jnp.concatenate([wm, ws], axis=1)                # (d1, 2*d2)
    bms = jnp.concatenate([bm, bs], axis=1)                # (1, 2*d2)

    cdt = compute_dtype
    dims = (w1.shape[0], w1.shape[1], wm.shape[1], w3.shape[1], w4.shape[1])
    return dict(
        w1=w1.astype(cdt), b1=b1,
        wms=wms.astype(cdt), bms=bms,
        w3=w3.astype(cdt), b3=b3,
        w4=w4.astype(cdt), b4=b4,
        dims=dims,
    )


def build_vae_forward(prepped, *, tb=512, out_dtype=jnp.float32):
    """Returns a jitted forward(x, eps) for the prepared parameters.

    tb: batch tile (rows per grid step).  512-1024 is a good default on all
    generations (the kernel is HBM-bound; feature widths are tiny, so even
    tb=2048 keeps the double-buffered working set a few MiB).  The tile is
    additionally capped so the grid keeps >= 4 steps when the batch allows it
    (>= 2 steps per TensorCore on v7x for megacore + DMA/compute overlap).
    out_dtype: storage dtype of the four outputs; jnp.bfloat16 halves the
    dominant HBM write stream on v6e/v7x if callers tolerate it.
    """
    d0, d1, d2, d3, d4 = prepped["dims"]
    weights = (prepped["w1"], prepped["b1"], prepped["wms"], prepped["bms"],
               prepped["w3"], prepped["b3"], prepped["w4"], prepped["b4"])
    out_isz = jnp.dtype(out_dtype).itemsize
    w_bytes = int(sum(w.size * w.dtype.itemsize for w in weights))

    def pick_tile(B):
        b8 = _round_up(B, 8)
        cap = max(8, _round_up(pl.cdiv(b8, 4), 8))     # keep >= 4 grid steps
        return max(8, (min(tb, b8, cap) // 8) * 8)

    def fwd(x, eps):
        B = x.shape[0]
        tb_eff = pick_tile(B)
        b_pad = _round_up(B, tb_eff)

        x_in = x.astype(jnp.float32)
        eps_in = eps.astype(jnp.float32)
        if b_pad != B:                     # only pad batch rows when needed
            x_in = jnp.pad(x_in, ((0, b_pad - B), (0, 0)))
            eps_in = jnp.pad(eps_in, ((0, b_pad - B), (0, 0)))

        def batch_spec(width):
            # Full feature dim in the block -> the HBM side of every DMA is a
            # fully contiguous range; no lane zero-padding of the outputs.
            return pl.BlockSpec((tb_eff, width), lambda i: (i, 0))

        def resident_spec(arr):
            return pl.BlockSpec(arr.shape, lambda i: (0,) * arr.ndim)

        in_specs = [batch_spec(d0), batch_spec(d2)] + \
                   [resident_spec(w) for w in weights]

        out_shapes = (
            jax.ShapeDtypeStruct((b_pad, d2), out_dtype),   # latent
            jax.ShapeDtypeStruct((b_pad, d4), out_dtype),   # reconstruction
            jax.ShapeDtypeStruct((b_pad, d2), out_dtype),   # mean
            jax.ShapeDtypeStruct((b_pad, d2), out_dtype),   # std (pre-exp)
        )
        out_specs = (batch_spec(d2), batch_spec(d4),
                     batch_spec(d2), batch_spec(d2))
        # NOTE: if output DMA is still exposed after enlarging the tile, try
        # pipeline_mode=pl.Buffered(3) on the output batch_spec()s.

        flops = 2 * b_pad * (d0 * d1 + d1 * 2 * d2 + d2 * d3 + d3 * d4)
        out_bytes = out_isz * b_pad * (3 * d2 + d4)
        cost = pl.CostEstimate(
            flops=int(flops),
            transcendentals=int(b_pad * (d2 + d4)),
            bytes_accessed=int(4 * (x_in.size + eps_in.size)
                               + out_bytes + w_bytes))

        lat, rec, mean, std = pl.pallas_call(
            _vae_kernel,
            out_shape=out_shapes,
            grid=(b_pad // tb_eff,),
            in_specs=in_specs,
            out_specs=out_specs,
            compiler_params=pltpu.CompilerParams(
                dimension_semantics=("parallel",)),
            cost_estimate=cost,
        )(x_in, eps_in, *weights)

        if b_pad != B:                     # only slice rows when we padded
            lat, rec, mean, std = lat[:B], rec[:B], mean[:B], std[:B]
        return lat, rec, mean, std

    return jax.jit(fwd)


def _init_linear(key, in_f, out_f):
    # deterministic, PyTorch-like uniform(-1/sqrt(in_f), 1/sqrt(in_f))
    kw, kb = jax.random.split(key)
    bound = 1.0 / (in_f ** 0.5)
    w = jax.random.uniform(kw, (out_f, in_f), jnp.float32, -bound, bound)
    b = jax.random.uniform(kb, (out_f,), jnp.float32, -bound, bound)
    return w, b


if __name__ == "__main__":
    # MLP VAE shapes; batch exercises the batched grid (4 tiles of 128 rows).
    B, d0, d1, d2, d3, d4 = 512, 32, 64, 16, 64, 32

    key = jax.random.PRNGKey(0)
    kx, keps, k1, k2, k3, k4, k5 = jax.random.split(key, 7)

    x = jax.random.normal(kx, (B, d0), jnp.float32)
    eps = jax.random.uniform(keps, (B, d2), jnp.float32)   # torch.rand_like -> U[0,1)

    w1, b1 = _init_linear(k1, d0, d1)
    wm, bm = _init_linear(k2, d1, d2)
    ws, bs = _init_linear(k3, d1, d2)
    w3, b3 = _init_linear(k4, d2, d3)
    w4, b4 = _init_linear(k5, d3, d4)
    raw = dict(w1=w1, b1=b1, wm=wm, bm=bm, ws=ws, bs=bs,
               w3=w3, b3=b3, w4=w4, b4=b4)

    # pure-JAX reference (identical math to MyVAE.forward)
    def ref(xx, ee):
        h1 = jnp.maximum(xx @ w1.T + b1, 0.0)
        m = h1 @ wm.T + bm
        s = h1 @ ws.T + bs
        lat = ee * jnp.exp(s) + m
        h3 = jnp.maximum(lat @ w3.T + b3, 0.0)
        rc = jnp.tanh(h3 @ w4.T + b4)
        return lat, rc, m, s

    rl, rr, rm, rs = ref(x, eps)

    # default path: f32 weights, f32 outputs -> exact correctness check
    fwd_f32 = build_vae_forward(prepare_params(raw, jnp.float32), tb=512)
    latent, recon, mean, std = fwd_f32(x, eps)
    jax.block_until_ready((latent, recon, mean, std))
    assert latent.shape == (B, d2) and recon.shape == (B, d4)
    assert jnp.allclose(latent, rl, atol=1e-5, rtol=1e-5)
    assert jnp.allclose(recon, rr, atol=1e-5, rtol=1e-5)
    assert jnp.allclose(mean, rm, atol=1e-5, rtol=1e-5)
    assert jnp.allclose(std, rs, atol=1e-5, rtol=1e-5)

    # bf16-weight path (v6e/v7x option; skip on v5e): looser sanity check
    fwd_bf16 = build_vae_forward(prepare_params(raw, jnp.bfloat16), tb=512)
    lat16, rec16, mean16, std16 = fwd_bf16(x, eps)
    jax.block_until_ready((lat16, rec16, mean16, std16))
    assert jnp.allclose(lat16, rl, atol=2e-1, rtol=2e-1)
    assert jnp.allclose(rec16, rr, atol=2e-1, rtol=2e-1)
    assert jnp.allclose(mean16, rm, atol=2e-1, rtol=2e-1)
    assert jnp.allclose(std16, rs, atol=2e-1, rtol=2e-1)

    # ragged batch: exercises the guarded row-padding / row-slicing branch
    Br = 200
    latr, recr, meanr, stdr = fwd_f32(x[:Br], eps[:Br])
    jax.block_until_ready((latr, recr, meanr, stdr))
    assert latr.shape == (Br, d2) and recr.shape == (Br, d4)
    assert jnp.allclose(recr, rr[:Br], atol=1e-5, rtol=1e-5)

    print("KERNEL_OK")
</pallas_src>

<mosaic_0001>
module attributes {stable_mosaic.version = 11 : i64} {
  func.func @_vae_kernel(%arg0: i32, %arg1: memref<128x32xf32, #tpu.memory_space<vmem>>, %arg2: memref<128x16xf32, #tpu.memory_space<vmem>>, %arg3: memref<32x64xf32, #tpu.memory_space<vmem>>, %arg4: memref<1x64xf32, #tpu.memory_space<vmem>>, %arg5: memref<64x32xf32, #tpu.memory_space<vmem>>, %arg6: memref<1x32xf32, #tpu.memory_space<vmem>>, %arg7: memref<16x64xf32, #tpu.memory_space<vmem>>, %arg8: memref<1x64xf32, #tpu.memory_space<vmem>>, %arg9: memref<64x32xf32, #tpu.memory_space<vmem>>, %arg10: memref<1x32xf32, #tpu.memory_space<vmem>>, %arg11: memref<128x16xf32, #tpu.memory_space<vmem>>, %arg12: memref<128x32xf32, #tpu.memory_space<vmem>>, %arg13: memref<128x16xf32, #tpu.memory_space<vmem>>, %arg14: memref<128x16xf32, #tpu.memory_space<vmem>>) attributes {dimension_semantics = [#tpu.dimension_semantics<parallel>], iteration_bounds = array<i64: 4>, scalar_prefetch = 0 : i64, scratch_operands = 0 : i64, tpu.core_type = #tpu.core_type<tc>, window_params = [{transform_indices = @transform_0, window_bounds = array<i64: 128, 32>}, {transform_indices = @transform_1, window_bounds = array<i64: 128, 16>}, {pipeline_mode = #tpu.pipeline_mode<synchronous>, transform_indices = @transform_2, window_bounds = array<i64: 32, 64>}, {pipeline_mode = #tpu.pipeline_mode<synchronous>, transform_indices = @transform_3, window_bounds = array<i64: 1, 64>}, {pipeline_mode = #tpu.pipeline_mode<synchronous>, transform_indices = @transform_4, window_bounds = array<i64: 64, 32>}, {pipeline_mode = #tpu.pipeline_mode<synchronous>, transform_indices = @transform_5, window_bounds = array<i64: 1, 32>}, {pipeline_mode = #tpu.pipeline_mode<synchronous>, transform_indices = @transform_6, window_bounds = array<i64: 16, 64>}, {pipeline_mode = #tpu.pipeline_mode<synchronous>, transform_indices = @transform_7, window_bounds = array<i64: 1, 64>}, {pipeline_mode = #tpu.pipeline_mode<synchronous>, transform_indices = @transform_8, window_bounds = array<i64: 64, 32>}, {pipeline_mode = #tpu.pipeline_mode<synchronous>, transform_indices = @transform_9, window_bounds = array<i64: 1, 32>}, {transform_indices = @transform_10, window_bounds = array<i64: 128, 16>}, {transform_indices = @transform_11, window_bounds = array<i64: 128, 32>}, {transform_indices = @transform_12, window_bounds = array<i64: 128, 16>}, {transform_indices = @transform_13, window_bounds = array<i64: 128, 16>}]} {
    %c0 = arith.constant 0 : index
    %c0_0 = arith.constant 0 : index
    %0 = vector.load %arg1[%c0, %c0_0] : memref<128x32xf32, #tpu.memory_space<vmem>>, vector<128x32xf32>
    %c0_1 = arith.constant 0 : index
    %c0_2 = arith.constant 0 : index
    %1 = vector.load %arg3[%c0_1, %c0_2] : memref<32x64xf32, #tpu.memory_space<vmem>>, vector<32x64xf32>
    %cst = arith.constant dense<0.000000e+00> : vector<128x64xf32>
    %2 = tpu.matmul %0, %1, %cst {dimension_numbers = #tpu.dot_dimension_numbers<[1], [0], [0], [1], [0, 0, 1, 1], [], []>} : vector<128x32xf32>, vector<32x64xf32>, vector<128x64xf32> -> vector<128x64xf32>
    %c0_3 = arith.constant 0 : index
    %c0_4 = arith.constant 0 : index
    %3 = vector.load %arg4[%c0_3, %c0_4] : memref<1x64xf32, #tpu.memory_space<vmem>>, vector<1x64xf32>
    %4 = vector.broadcast %3 : vector<1x64xf32> to vector<128x64xf32>
    %5 = arith.addf %2, %4 : vector<128x64xf32>
    %cst_5 = arith.constant 0.000000e+00 : f32
    %6 = vector.broadcast %cst_5 : f32 to vector<128x64xf32>
    %7 = arith.maximumf %5, %6 : vector<128x64xf32>
    %c0_6 = arith.constant 0 : index
    %c0_7 = arith.constant 0 : index
    %8 = vector.load %arg5[%c0_6, %c0_7] : memref<64x32xf32, #tpu.memory_space<vmem>>, vector<64x32xf32>
    %cst_8 = arith.constant dense<0.000000e+00> : vector<128x32xf32>
    %9 = tpu.matmul %7, %8, %cst_8 {dimension_numbers = #tpu.dot_dimension_numbers<[1], [0], [0], [1], [0, 0, 1, 1], [], []>} : vector<128x64xf32>, vector<64x32xf32>, vector<128x32xf32> -> vector<128x32xf32>
    %c0_9 = arith.constant 0 : index
    %c0_10 = arith.constant 0 : index
    %10 = vector.load %arg6[%c0_9, %c0_10] : memref<1x32xf32, #tpu.memory_space<vmem>>, vector<1x32xf32>
    %11 = vector.broadcast %10 : vector<1x32xf32> to vector<128x32xf32>
    %12 = arith.addf %9, %11 : vector<128x32xf32>
    %13 = vector.extract_strided_slice %12 {offsets = [0, 0], sizes = [128, 16], strides = [1, 1]} : vector<128x32xf32> to vector<128x16xf32>
    %14 = vector.extract_strided_slice %12 {offsets = [0, 16], sizes = [128, 16], strides = [1, 1]} : vector<128x32xf32> to vector<128x16xf32>
    %c0_11 = arith.constant 0 : index
    %c0_12 = arith.constant 0 : index
    %15 = vector.load %arg2[%c0_11, %c0_12] : memref<128x16xf32, #tpu.memory_space<vmem>>, vector<128x16xf32>
    %16 = math.exp %14 : vector<128x16xf32>
    %17 = arith.mulf %15, %16 : vector<128x16xf32>
    %18 = arith.addf %17, %13 : vector<128x16xf32>
    %c0_13 = arith.constant 0 : index
    %c0_14 = arith.constant 0 : index
    %19 = vector.load %arg7[%c0_13, %c0_14] : memref<16x64xf32, #tpu.memory_space<vmem>>, vector<16x64xf32>
    %cst_15 = arith.constant dense<0.000000e+00> : vector<128x64xf32>
    %20 = tpu.matmul %18, %19, %cst_15 {dimension_numbers = #tpu.dot_dimension_numbers<[1], [0], [0], [1], [0, 0, 1, 1], [], []>} : vector<128x16xf32>, vector<16x64xf32>, vector<128x64xf32> -> vector<128x64xf32>
    %c0_16 = arith.constant 0 : index
    %c0_17 = arith.constant 0 : index
    %21 = vector.load %arg8[%c0_16, %c0_17] : memref<1x64xf32, #tpu.memory_space<vmem>>, vector<1x64xf32>
    %22 = vector.broadcast %21 : vector<1x64xf32> to vector<128x64xf32>
    %23 = arith.addf %20, %22 : vector<128x64xf32>
    %cst_18 = arith.constant 0.000000e+00 : f32
    %24 = vector.broadcast %cst_18 : f32 to vector<128x64xf32>
    %25 = arith.maximumf %23, %24 : vector<128x64xf32>
    %c0_19 = arith.constant 0 : index
    %c0_20 = arith.constant 0 : index
    %26 = vector.load %arg9[%c0_19, %c0_20] : memref<64x32xf32, #tpu.memory_space<vmem>>, vector<64x32xf32>
    %cst_21 = arith.constant dense<0.000000e+00> : vector<128x32xf32>
    %27 = tpu.matmul %25, %26, %cst_21 {dimension_numbers = #tpu.dot_dimension_numbers<[1], [0], [0], [1], [0, 0, 1, 1], [], []>} : vector<128x64xf32>, vector<64x32xf32>, vector<128x32xf32> -> vector<128x32xf32>
    %c0_22 = arith.constant 0 : index
    %c0_23 = arith.constant 0 : index
    %28 = vector.load %arg10[%c0_22, %c0_23] : memref<1x32xf32, #tpu.memory_space<vmem>>, vector<1x32xf32>
    %29 = vector.broadcast %28 : vector<1x32xf32> to vector<128x32xf32>
    %30 = arith.addf %27, %29 : vector<128x32xf32>
    %31 = math.tanh %30 : vector<128x32xf32>
    %c0_24 = arith.constant 0 : index
    %c0_25 = arith.constant 0 : index
    %32 = vector.load %arg11[%c0_24, %c0_25] : memref<128x16xf32, #tpu.memory_space<vmem>>, vector<128x16xf32>
    tpu.vector_store %arg11[%c0_24, %c0_25], %18 {strides = array<i32>} : memref<128x16xf32, #tpu.memory_space<vmem>>, vector<128x16xf32>,
    %c0_26 = arith.constant 0 : index
    %c0_27 = arith.constant 0 : index
    %33 = vector.load %arg12[%c0_26, %c0_27] : memref<128x32xf32, #tpu.memory_space<vmem>>, vector<128x32xf32>
    tpu.vector_store %arg12[%c0_26, %c0_27], %31 {strides = array<i32>} : memref<128x32xf32, #tpu.memory_space<vmem>>, vector<128x32xf32>,
    %c0_28 = arith.constant 0 : index
    %c0_29 = arith.constant 0 : index
    %34 = vector.load %arg13[%c0_28, %c0_29] : memref<128x16xf32, #tpu.memory_space<vmem>>, vector<128x16xf32>
    tpu.vector_store %arg13[%c0_28, %c0_29], %13 {strides = array<i32>} : memref<128x16xf32, #tpu.memory_space<vmem>>, vector<128x16xf32>,
    %c0_30 = arith.constant 0 : index
    %c0_31 = arith.constant 0 : index
    %35 = vector.load %arg14[%c0_30, %c0_31] : memref<128x16xf32, #tpu.memory_space<vmem>>, vector<128x16xf32>
    tpu.vector_store %arg14[%c0_30, %c0_31], %14 {strides = array<i32>} : memref<128x16xf32, #tpu.memory_space<vmem>>, vector<128x16xf32>,
    return
  }
  func.func @transform_0(%arg0: i32) -> (i32, i32) {
    %c0_i32 = arith.constant 0 : i32
    %c0_i32_0 = arith.constant 0 : i32
    return %arg0, %c0_i32 : i32, i32
  }
  func.func @transform_1(%arg0: i32) -> (i32, i32) {
    %c0_i32 = arith.constant 0 : i32
    %c0_i32_0 = arith.constant 0 : i32
    return %arg0, %c0_i32 : i32, i32
  }
  func.func @transform_2(%arg0: i32) -> (i32, i32) {
    %c0_i32 = arith.constant 0 : i32
    %c0_i32_0 = arith.constant 0 : i32
    %c0_i32_1 = arith.constant 0 : i32
    return %c0_i32, %c0_i32_0 : i32, i32
  }
  func.func @transform_3(%arg0: i32) -> (i32, i32) {
    %c0_i32 = arith.constant 0 : i32
    %c0_i32_0 = arith.constant 0 : i32
    %c0_i32_1 = arith.constant 0 : i32
    return %c0_i32, %c0_i32_0 : i32, i32
  }
  func.func @transform_4(%arg0: i32) -> (i32, i32) {
    %c0_i32 = arith.constant 0 : i32
    %c0_i32_0 = arith.constant 0 : i32
    %c0_i32_1 = arith.constant 0 : i32
    return %c0_i32, %c0_i32_0 : i32, i32
  }
  func.func @transform_5(%arg0: i32) -> (i32, i32) {
    %c0_i32 = arith.constant 0 : i32
    %c0_i32_0 = arith.constant 0 : i32
    %c0_i32_1 = arith.constant 0 : i32
    return %c0_i32, %c0_i32_0 : i32, i32
  }
  func.func @transform_6(%arg0: i32) -> (i32, i32) {
    %c0_i32 = arith.constant 0 : i32
    %c0_i32_0 = arith.constant 0 : i32
    %c0_i32_1 = arith.constant 0 : i32
    return %c0_i32, %c0_i32_0 : i32, i32
  }
  func.func @transform_7(%arg0: i32) -> (i32, i32) {
    %c0_i32 = arith.constant 0 : i32
    %c0_i32_0 = arith.constant 0 : i32
    %c0_i32_1 = arith.constant 0 : i32
    return %c0_i32, %c0_i32_0 : i32, i32
  }
  func.func @transform_8(%arg0: i32) -> (i32, i32) {
    %c0_i32 = arith.constant 0 : i32
    %c0_i32_0 = arith.constant 0 : i32
    %c0_i32_1 = arith.constant 0 : i32
    return %c0_i32, %c0_i32_0 : i32, i32
  }
  func.func @transform_9(%arg0: i32) -> (i32, i32) {
    %c0_i32 = arith.constant 0 : i32
    %c0_i32_0 = arith.constant 0 : i32
    %c0_i32_1 = arith.constant 0 : i32
    return %c0_i32, %c0_i32_0 : i32, i32
  }
  func.func @transform_10(%arg0: i32) -> (i32, i32) {
    %c0_i32 = arith.constant 0 : i32
    %c0_i32_0 = arith.constant 0 : i32
    return %arg0, %c0_i32 : i32, i32
  }
  func.func @transform_11(%arg0: i32) -> (i32, i32) {
    %c0_i32 = arith.constant 0 : i32
    %c0_i32_0 = arith.constant 0 : i32
    return %arg0, %c0_i32 : i32, i32
  }
  func.func @transform_12(%arg0: i32) -> (i32, i32) {
    %c0_i32 = arith.constant 0 : i32
    %c0_i32_0 = arith.constant 0 : i32
    return %arg0, %c0_i32 : i32, i32
  }
  func.func @transform_13(%arg0: i32) -> (i32, i32) {
    %c0_i32 = arith.constant 0 : i32
    %c0_i32_0 = arith.constant 0 : i32
    return %arg0, %c0_i32 : i32, i32
  }
}

</mosaic_0001>

<bundles_post_ra>
// kernel: fwd.1
= control target key start
LH: loop header
LB: loop body
LE: loop exit
PB: predicated region body
PF: predicated region fallthrough
CT: control target
= control target key end

     0   :  { %s2354_s25 = smov 0   ;;  %s2869_s0 = inlined_call_operand.vmem [shape: f32[512,32], index: 0, kind: input, shape index: {}]   ;;  %s2870_s1 = inlined_call_operand.vmem [shape: f32[512,16], index: 1, kind: input, shape index: {}]   ;;  %s2871_s2 = inlined_call_operand.vmem [shape: f32[32,64], index: 2, kind: input, shape index: {}]   ;;  %s2872_s3 = inlined_call_operand.vmem [shape: f32[1,64], index: 3, kind: input, shape index: {}]   ;;  %s2873_s4 = inlined_call_operand.vmem [shape: f32[64,32], index: 4, kind: input, shape index: {}]   ;;  %s2874_s5 = inlined_call_operand.vmem [shape: f32[1,32], index: 5, kind: input, shape index: {}]   ;;  %s2875_s6 = inlined_call_operand.vmem [shape: f32[16,64], index: 6, kind: input, shape index: {}]   ;;  %s2876_s7 = inlined_call_operand.vmem [shape: f32[1,64], index: 7, kind: input, shape index: {}]   ;;  %s2877_s8 = inlined_call_operand.vmem [shape: f32[64,32], index: 8, kind: input, shape index: {}]   ;;  %s2878_s9 = inlined_call_operand.vmem [shape: f32[1,32], index: 9, kind: input, shape index: {}]   ;;  %s2879_s10 = inlined_call_operand.vmem [shape: f32[512,16], index: 10, kind: output, shape index: {0}]   ;;  %s2880_s11 = inlined_call_operand.vmem [shape: f32[512,32], index: 11, kind: output, shape index: {1}]   ;;  %s2881_s12 = inlined_call_operand.vmem [shape: f32[512,16], index: 12, kind: output, shape index: {2}]   ;;  %s2882_s13 = inlined_call_operand.vmem [shape: f32[512,16], index: 13, kind: output, shape index: {3}]  }
   0x1 LB: > { %s1837_s26 = sadd.s32 4294967295, %s2281_s25   ;;  %p1841_p0 = scmp.ge.s32.totalorder %s2281_s25, 1  ;;  %s2281_s25 = sphi %s2354_s25, %s24_s25  }
   0x2   : > { %p406_p1 = scmp.lt.s32.totalorder %s2281_s25, 5 }
   0x4   : > { %p407_p2 = pnand %p1841_p0, %p406_p1 }
   0x5   : > { %v522_v0 = vld [vmem:[%s2871_s2] sm:$0xff] (!%p407_p2)  ;;  %v523_v1 = vld [vmem:[%s2871_s2 + $0x8] sm:$0xff] (!%p407_p2)  ;;  %v524_v2 = vld [vmem:[%s2871_s2 + $0x10] sm:$0xff] (!%p407_p2)  ;;  %s1842_s16 = sshll.u32 (!%p407_p2), %s1837_s26, 4  ;;  %vm533_vm0 = vcmask (!%p407_p2), 261120   ;;  %vm758_vm1 = vcmask (!%p407_p2), 523264  }
   0x6   : > { %410 = sbr.rel (%p407_p2) target bundleno = 1060 (0x424), region = 60  ;;  %v2150_v3 = vpack.c.bf16 (!%p407_p2), %v523_v1, %v522_v0  ;;  %v525_v4 = vld [vmem:[%s2871_s2 + $0x18] sm:$0xff] (!%p407_p2)  ;;  %p471_p3 = scmp.lt.s32.totalorder (!%p407_p2), %s1842_s16, 63  ;;  %v743_v5 = vld [vmem:[%s2873_s4] sm:$0xff] (!%p407_p2)  ;;  %v744_v6 = vld [vmem:[%s2873_s4 + $0x8] sm:$0xff] (!%p407_p2)  ;;  %vm1105_vm2 = vcmask (!%p407_p2), 130048  }
   0x7   : > { %v2154_v7 = vpack.c.bf16 (!%p407_p2), %v525_v4, %v524_v2  ;;  %v2158_v8 = vpack.c.bf16 (!%p407_p2), %v744_v6, %v743_v5  ;;  %v745_v9 = vld [vmem:[%s2873_s4 + $0x10] sm:$0xff] (!%p407_p2)  ;;  %v746_v10 = vld [vmem:[%s2873_s4 + $0x18] sm:$0xff] (!%p407_p2)  ;;  %v747_v12 = vld [vmem:[%s2873_s4 + $0x20] sm:$0xff] (!%p407_p2) }
   0x8   : > { %2151 = vmatprep.subr.bf16.mxu0 (!%p407_p2), %v2150_v3  ;;  %v2162_v11 = vpack.c.bf16 (!%p407_p2), %v746_v10, %v745_v9  ;;  %v748_v13 = vld [vmem:[%s2873_s4 + $0x28] sm:$0xff] (!%p407_p2)  ;;  %v749_v18 = vld [vmem:[%s2873_s4 + $0x30] sm:$0xff] (!%p407_p2)  ;;  %v750_v19 = vld [vmem:[%s2873_s4 + $0x38] sm:$0xff] (!%p407_p2) }
   0x9   : > { %2153 = vmatpush3.bf16.msra.mxu0 (!%p407_p2), %v2150_v3  ;;  %2194 = vmatprep.subr.bf16.mxu1 (!%p407_p2), %v2158_v8  ;;  %v2166_v16 = vpack.c.bf16 (!%p407_p2), %v748_v13, %v747_v12  ;;  %v2170_v21 = vpack.c.bf16 (!%p407_p2), %v750_v19, %v749_v18  ;;  %v1854_v34 = vld [vmem:[%s2872_s3] ss:$0 sm:$0xff] (!%p407_p2) }
   0xa   : > { %2155 = vmatprep.subr.bf16.mxu0 (!%p407_p2), %v2154_v7  ;;  %2198 = vmatpush3.bf16.msra.mxu1 (!%p407_p2), %v2158_v8  ;;  %v2460_v19 = vld [vmem:[%s2874_s5] ss:$0 sm:$0xff] (!%p407_p2) }
   0xb   : > { %2195 = vmatprep.subr.bf16.mxu1 (!%p407_p2), %v2162_v11 }
   0xd   : > { %s2884_s16 = smov (!%p471_p3, %s1842_s16), 63  ;;  %2157 = vmatpush3.bf16.msra.mxu0 %v2154_v7 }
   0xe   : > { %s2386_s28 = sshll.u32 %s2884_s16, 3  ;;  %2159 = vmatprep.subr.bf16.mxu0 %v2158_v8  ;;  %2199 = vmatpush3.bf16.msra.mxu1 %v2162_v11  ;;  %s2283_s16 = smov 112  }
   0xf   : > { %s2398_s19 = scalar_lea.vmem %s2869_s0, %s2386_s28  ;;  %2196 = vmatprep.subr.bf16.mxu1 %v2166_v16  ;;  %s2466_s14 = scalar_lea.vmem %s2881_s12, %s2386_s28 }
  0x10   : > { %v506_v14 = vld [vmem:[%s2398_s19] sm:$0xff]  ;;  %v507_v15 = vld [vmem:[%s2398_s19 + $0x8] sm:$0xff]  ;;  %v508_v17 = vld [vmem:[%s2398_s19 + $0x10] sm:$0xff]  ;;  %s2662_s24 = scalar_lea.vmem %s2870_s1, %s2386_s28  ;;  %s2669_s29 = scalar_lea.vmem %s2879_s10, %s2386_s28 }
  0x11   : > { %2018 = vmatprep.mubr.msk.f32.mxu0 %vm533_vm0, %v506_v14  ;;  %v509_v20 = vld [vmem:[%s2398_s19 + $0x18] sm:$0xff]  ;;  %v510_v22 = vld [vmem:[%s2398_s19 + $0x20] sm:$0xff]  ;;  %v511_v23 = vld [vmem:[%s2398_s19 + $0x28] sm:$0xff]  ;;  %s2822_s22 = scalar_lea.vmem %s2880_s11, %s2386_s28 }
  0x12   : > { %2019 = vmatmul.mubr.msk.f32.vlgmr.msra.gmra.mrb[0].mxu0 %vm533_vm0, %v507_v15  ;;  %2200 = vmatpush3.bf16.msra.mxu1 %v2166_v16  ;;  %v512_v24 = vld [vmem:[%s2398_s19 + $0x30] sm:$0xff]  ;;  %v513_v25 = vld [vmem:[%s2398_s19 + $0x38] sm:$0xff]  ;;  %v514_v26 = vld [vmem:[%s2398_s19 + $0x40] sm:$0xff] }
  0x13   : > { %2021 = vmatprep.mubr.msk.f32.mxu0 %vm533_vm0, %v508_v17  ;;  %2161 = vmatpush3.bf16.msra.mxu0 %v2158_v8  ;;  %v515_v27 = vld [vmem:[%s2398_s19 + $0x48] sm:$0xff]  ;;  %v516_v28 = vld [vmem:[%s2398_s19 + $0x50] sm:$0xff]  ;;  %v517_v29 = vld [vmem:[%s2398_s19 + $0x58] sm:$0xff] }
  0x14   : > { %2163 = vmatprep.subr.bf16.mxu0 %v2162_v11  ;;  %2197 = vmatprep.subr.bf16.mxu1 %v2170_v21  ;;  %v518_v30 = vld [vmem:[%s2398_s19 + $0x60] sm:$0xff]  ;;  %v519_v31 = vld [vmem:[%s2398_s19 + $0x68] sm:$0xff]  ;;  %v520_v32 = vld [vmem:[%s2398_s19 + $0x70] sm:$0xff] }
  0x15   : > { %v521_v33 = vld [vmem:[%s2398_s19 + $0x78] sm:$0xff] }
  0x16   : > { %2022 = vmatmul.mubr.msk.f32.gmra.mrb[2].mxu0 %vm533_vm0, %v509_v20  ;;  %2201 = vmatpush3.bf16.msra.mxu1 %v2170_v21 }
  0x17   : > { %2024 = vmatprep.mubr.msk.f32.mxu0 %vm533_vm0, %v510_v22  ;;  %2165 = vmatpush3.bf16.msra.mxu0 %v2162_v11 }
  0x18   : > { %2167 = vmatprep.subr.bf16.mxu0 %v2166_v16 }
  0x1a   : > { %2025 = vmatmul.mubr.msk.f32.gmra.mrb[4].mxu0 %vm533_vm0, %v511_v23 }
  0x1b   : > { %2027 = vmatprep.mubr.msk.f32.mxu0 %vm533_vm0, %v512_v24  ;;  %2169 = vmatpush3.bf16.msra.mxu0 %v2166_v16 }
  0x1c   : > { %2171 = vmatprep.subr.bf16.mxu0 %v2170_v21 }
  0x1e   : > { %2028 = vmatmul.mubr.msk.f32.gmra.mrb[6].mxu0 %vm533_vm0, %v513_v25 }
  0x1f   : > { %2030 = vmatprep.mubr.msk.f32.mxu0 %vm533_vm0, %v514_v26  ;;  %2173 = vmatpush3.bf16.msra.mxu0 %v2170_v21 }
  0x22   : > { %2031 = vmatmul.mubr.msk.f32.gmra.mrb[8].mxu0 %vm533_vm0, %v515_v27 }
  0x23   : > { %2033 = vmatprep.mubr.msk.f32.mxu0 %vm533_vm0, %v516_v28 }
  0x26   : > { %2034 = vmatmul.mubr.msk.f32.gmra.mrb[10].mxu0 %vm533_vm0, %v517_v29  ;;  %v1096_v29 = vld [vmem:[%s2875_s6] sm:$0xff] }
  0x27   : > { %2036 = vmatprep.mubr.msk.f32.mxu0 %vm533_vm0, %v518_v30  ;;  %v1097_v30 = vld [vmem:[%s2875_s6 + $0x8] sm:$0xff] }
  0x2a   : > { %2037 = vmatmul.mubr.msk.f32.gmra.mrb[12].mxu0 %vm533_vm0, %v519_v31 }
  0x2b   : > { %2039 = vmatprep.mubr.msk.f32.mxu0 %vm533_vm0, %v520_v32  ;;  %v2174_v32 = vpack.c.bf16 %v1097_v30, %v1096_v29  ;;  %v1318_v30 = vld [vmem:[%s2877_s8 + $0x18] sm:$0xff] }
  0x2d   : > { %2175 = vmatprep.subr.bf16.mxu0 %v2174_v32 }
  0x2e   : > { %2040 = vmatmul.mubr.msk.f32.gmra.mrb[14].mxu0 %vm533_vm0, %v521_v33 }
  0xe5   : > { %v2020_v35 = vpop.f32.mrb[0].mxu0 }
  0xe6   : > { %v654_v36 = vadd.f32 %v2020_v35, %v1854_v34  ;;  %v648_v37 = vpop.f32.mrb[1].mxu0 }
  0xe7   : > { %v649_v38 = vadd.f32 %v1854_v34, %v648_v37 }
  0xe8   : > { %v728_v41 = vmax.f32 %v654_v36, 0.0 }
  0xe9   : > { %v727_v39 = vmax.f32 %v649_v38, 0.0  ;;  %v2023_v40 = vpop.f32.mrb[2].mxu0 }
  0xea   : > { %v664_v42 = vadd.f32 %v2023_v40, %v1854_v34  ;;  %v658_v43 = vpop.f32.mrb[3].mxu0 }
  0xeb   : > { %v659_v44 = vadd.f32 %v1854_v34, %v658_v43  ;;  %2058 = vmatprep.mubr.msk.f32.mxu0 %vm758_vm1, %v727_v39 }
  0xec   : > { %2059 = vmatmul.mubr.msk.f32.vlgmr.msra.gmra.mrb[16].mxu0 %vm758_vm1, %v728_v41  ;;  %v730_v47 = vmax.f32 %v664_v42, 0.0 }
  0xed   : > { %v729_v45 = vmax.f32 %v659_v44, 0.0  ;;  %v2026_v46 = vpop.f32.mrb[4].mxu0  ;;  %2177 = vmatpush3.bf16.msra.mxu0 %v2174_v32 }
  0xee   : > { %v674_v48 = vadd.f32 %v2026_v46, %v1854_v34  ;;  %v668_v49 = vpop.f32.mrb[5].mxu0 }
  0xef   : > { %v669_v50 = vadd.f32 %v1854_v34, %v668_v49  ;;  %2061 = vmatprep.mubr.msk.f32.mxu1 %vm758_vm1, %v729_v45 }
  0xf0   : > { %v732_v51 = vmax.f32 %v674_v48, 0.0  ;;  %2062 = vmatmul.mubr.msk.f32.vlgmr.msra.gmra.mrb[0].mxu1 %vm758_vm1, %v730_v47 }
  0xf1   : > { %v731_v52 = vmax.f32 %v669_v50, 0.0  ;;  %v2029_v53 = vpop.f32.mrb[6].mxu0 }
  0xf2   : > { %v684_v54 = vadd.f32 %v2029_v53, %v1854_v34  ;;  %v678_v55 = vpop.f32.mrb[7].mxu0 }
  0xf3   : > { %v679_v56 = vadd.f32 %v1854_v34, %v678_v55  ;;  %2064 = vmatprep.mubr.msk.f32.mxu1 %vm758_vm1, %v731_v52 }
  0xf4   : > { %v734_v57 = vmax.f32 %v684_v54, 0.0  ;;  %2065 = vmatmul.mubr.msk.f32.gmra.mrb[2].mxu1 %vm758_vm1, %v732_v51 }
  0xf5   : > { %v733_v58 = vmax.f32 %v679_v56, 0.0  ;;  %v2032_v59 = vpop.f32.mrb[8].mxu0 }
  0xf6   : > { %v694_v60 = vadd.f32 %v2032_v59, %v1854_v34  ;;  %v688_v61 = vpop.f32.mrb[9].mxu0 }
  0xf7   : > { %v689_v62 = vadd.f32 %v1854_v34, %v688_v61  ;;  %2067 = vmatprep.mubr.msk.f32.mxu1 %vm758_vm1, %v733_v58 }
  0xf8   : > { %v736_v63 = vmax.f32 %v694_v60, 0.0  ;;  %2068 = vmatmul.mubr.msk.f32.gmra.mrb[4].mxu1 %vm758_vm1, %v734_v57 }
  0xf9   : > { %v735_v0 = vmax.f32 %v689_v62, 0.0  ;;  %v2035_v1 = vpop.f32.mrb[10].mxu0 }
  0xfa   : > { %v704_v2 = vadd.f32 %v2035_v1, %v1854_v34  ;;  %v698_v3 = vpop.f32.mrb[11].mxu0 }
  0xfb   : > { %v699_v4 = vadd.f32 %v1854_v34, %v698_v3  ;;  %2070 = vmatprep.mubr.msk.f32.mxu1 %vm758_vm1, %v735_v0 }
  0xfc   : > { %v738_v5 = vmax.f32 %v704_v2, 0.0  ;;  %2071 = vmatmul.mubr.msk.f32.gmra.mrb[6].mxu1 %vm758_vm1, %v736_v63 }
  0xfd   : > { %v737_v6 = vmax.f32 %v699_v4, 0.0  ;;  %v2038_v7 = vpop.f32.mrb[12].mxu0 }
  0xfe   : > { %v714_v8 = vadd.f32 %v2038_v7, %v1854_v34  ;;  %v708_v9 = vpop.f32.mrb[13].mxu0 }
  0xff   : > { %v709_v10 = vadd.f32 %v1854_v34, %v708_v9  ;;  %2073 = vmatprep.mubr.msk.f32.mxu1 %vm758_vm1, %v737_v6 }
 0x100   : > { %v740_v11 = vmax.f32 %v714_v8, 0.0  ;;  %2074 = vmatmul.mubr.msk.f32.gmra.mrb[8].mxu1 %vm758_vm1, %v738_v5 }
 0x101   : > { %v739_v12 = vmax.f32 %v709_v10, 0.0  ;;  %v2041_v13 = vpop.f32.mrb[14].mxu0 }
 0x102   : > { %v724_v14 = vadd.f32 %v2041_v13, %v1854_v34  ;;  %v718_v15 = vpop.f32.mrb[15].mxu0 }
 0x103   : > { %v719_v16 = vadd.f32 %v1854_v34, %v718_v15  ;;  %2076 = vmatprep.mubr.msk.f32.mxu1 %vm758_vm1, %v739_v12 }
 0x104   : > { %v742_v17 = vmax.f32 %v724_v14, 0.0  ;;  %2077 = vmatmul.mubr.msk.f32.gmra.mrb[10].mxu1 %vm758_vm1, %v740_v11 }
 0x105   : > { %v741_v18 = vmax.f32 %v719_v16, 0.0 }
 0x107   : > { %2079 = vmatprep.mubr.msk.f32.mxu1 %vm758_vm1, %v741_v18 }
 0x108   : > { %2080 = vmatmul.mubr.msk.f32.gmra.mrb[12].mxu1 %vm758_vm1, %v742_v17 }
 0x1bf   : > { %v2060_v20 = vpop.f32.mrb[16].mxu0 }
 0x1c0   : > { %v2469_v21 = vadd.f32 %v2060_v20, %v2460_v19  ;;  %v873_v22 = vpop.f32.mrb[17].mxu0 }
 0x1c1   : > { %v2472_v23 = vadd.f32 %v2460_v19, %v873_v22 }
 0x1c2   : > { %1572 = vst.msk [vmem:[%s2466_s14 + $0x8] sm:$0xff] %vm1105_vm2, %v2469_v21  ;;  %v970_v26 = vmul.f32 1.442695, %v2469_v21 }
 0x1c3   : > { %v968_v24 = vmul.f32 1.442695, %v2472_v23  ;;  %1571 = vst.msk [vmem:[%s2466_s14] sm:$0xff] %vm1105_vm2, %v2472_v23  ;;  %v2063_v25 = vpop.f32.mrb[0].mxu1 }
 0x1c4   : > { %v2483_v27 = vadd.f32 %v2063_v25, %v2460_v19  ;;  %v883_v28 = vpop.f32.mrb[1].mxu1  ;;  %v1315_v25 = vld [vmem:[%s2877_s8] sm:$0xff] }
 0x1c5   : > { %2211 = vpow2.f32 %v968_v24  ;;  %v2492_v31 = vadd.f32 %v2460_v19, %v883_v28  ;;  %v1317_v28 = vld [vmem:[%s2877_s8 + $0x10] sm:$0xff] }
 0x1c6   : > { %1574 = vst.msk [vmem:[%s2466_s14 + $0x18] sm:$0xff] %vm1105_vm2, %v2483_v27  ;;  %2213 = vpow2.f32 %v970_v26  ;;  %v974_v35 = vmul.f32 1.442695, %v2483_v27  ;;  %v1316_v26 = vld [vmem:[%s2877_s8 + $0x8] sm:$0xff]  ;;  %v2182_v32 = vpack.c.bf16 %v1318_v30, %v1317_v28 }
 0x1c7   : > { %v972_v33 = vmul.f32 1.442695, %v2492_v31  ;;  %1573 = vst.msk [vmem:[%s2466_s14 + $0x10] sm:$0xff] %vm1105_vm2, %v2492_v31  ;;  %v2066_v34 = vpop.f32.mrb[2].mxu1  ;;  %v2178_v29 = vpack.c.bf16 %v1316_v26, %v1315_v25 }
 0x1c8   : > { %v2503_v36 = vadd.f32 %v2066_v34, %v2460_v19  ;;  %v893_v37 = vpop.f32.mrb[3].mxu1  ;;  %v1320_v34 = vld [vmem:[%s2877_s8 + $0x28] sm:$0xff] }
 0x1c9   : > { %2215 = vpow2.f32 %v972_v33  ;;  %v2506_v38 = vadd.f32 %v2460_v19, %v893_v37  ;;  %2179 = vmatprep.subr.bf16.mxu1 %v2178_v29  ;;  %v1319_v33 = vld [vmem:[%s2877_s8 + $0x20] sm:$0xff]  ;;  %v1321_v37 = vld [vmem:[%s2877_s8 + $0x30] sm:$0xff] }
 0x1ca   : > { %1576 = vst.msk [vmem:[%s2466_s14 + $0x28] sm:$0xff] %vm1105_vm2, %v2503_v36  ;;  %2217 = vpow2.f32 %v974_v35  ;;  %v978_v41 = vmul.f32 1.442695, %v2503_v36  ;;  %2181 = vmatpush3.bf16.msra.mxu1 %v2178_v29  ;;  %v2186_v35 = vpack.c.bf16 %v1320_v34, %v1319_v33 }
 0x1cb   : > { %v976_v39 = vmul.f32 1.442695, %v2506_v38  ;;  %1575 = vst.msk [vmem:[%s2466_s14 + $0x20] sm:$0xff] %vm1105_vm2, %v2506_v38  ;;  %v2069_v40 = vpop.f32.mrb[4].mxu1  ;;  %2183 = vmatprep.subr.bf16.mxu1 %v2182_v32 }
 0x1cc   : > { %v2517_v42 = vadd.f32 %v2069_v40, %v2460_v19  ;;  %v903_v43 = vpop.f32.mrb[5].mxu1 }
 0x1cd   : > { %2219 = vpow2.f32 %v976_v39  ;;  %v2520_v44 = vadd.f32 %v2460_v19, %v903_v43  ;;  %v1322_v39 = vld [vmem:[%s2877_s8 + $0x38] sm:$0xff] }
 0x1ce   : > { %1578 = vst.msk [vmem:[%s2466_s14 + $0x38] sm:$0xff] %vm1105_vm2, %v2517_v42  ;;  %2221 = vpow2.f32 %v978_v41  ;;  %v982_v48 = vmul.f32 1.442695, %v2517_v42  ;;  %2185 = vmatpush3.bf16.msra.mxu1 %v2182_v32  ;;  %v2190_v40 = vpack.c.bf16 %v1322_v39, %v1321_v37  ;;  %v952_v41 = vld [vmem:[%s2662_s24] sm:$0xff]  ;;  %v965_v32 = vld [vmem:[%s2662_s24 + $0x68] sm:$0xff] }
 0x1cf   : > { %v2212_v45 = vpop.eup %2211  ;;  %v980_v46 = vmul.f32 1.442695, %v2520_v44  ;;  %1577 = vst.msk [vmem:[%s2466_s14 + $0x30] sm:$0xff] %vm1105_vm2, %v2520_v44  ;;  %v2072_v47 = vpop.f32.mrb[6].mxu1  ;;  %2187 = vmatprep.subr.bf16.mxu1 %v2186_v35 }
 0x1d0   : > { %v2531_v49 = vadd.f32 %v2072_v47, %v2460_v19  ;;  %v913_v50 = vpop.f32.mrb[7].mxu1  ;;  %1016 = vrot.lane.b32.xlu0 %v2212_v45, %s2283_s16  ;;  %v2214_v52 = vpop.eup %2213  ;;  %v953_v47 = vld [vmem:[%s2662_s24 + $0x8] sm:$0xff] }
 0x1d1   : > { %2223 = vpow2.f32 %v980_v46  ;;  %v2535_v51 = vadd.f32 %v2460_v19, %v913_v50  ;;  %v954_v46 = vld [vmem:[%s2662_s24 + $0x10] sm:$0xff] }
 0x1d2   : > { %1580 = vst.msk [vmem:[%s2466_s14 + $0x48] sm:$0xff] %vm1105_vm2, %v2531_v49  ;;  %2225 = vpow2.f32 %v982_v48  ;;  %v986_v56 = vmul.f32 1.442695, %v2531_v49  ;;  %2189 = vmatpush3.bf16.msra.mxu1 %v2186_v35 }
 0x1d3   : > { %v2216_v53 = vpop.eup %2215  ;;  %v984_v54 = vmul.f32 1.442695, %v2535_v51  ;;  %1579 = vst.msk [vmem:[%s2466_s14 + $0x40] sm:$0xff] %vm1105_vm2, %v2535_v51  ;;  %v2075_v55 = vpop.f32.mrb[8].mxu1  ;;  %2191 = vmatprep.subr.bf16.mxu1 %v2190_v40 }
 0x1d4   : > { %v2546_v57 = vadd.f32 %v2075_v55, %v2460_v19  ;;  %v923_v58 = vpop.f32.mrb[9].mxu1  ;;  %1020 = vrot.lane.b32.xlu1 %v2216_v53, %s2283_s16  ;;  %1018 = vrot.lane.b32.xlu0 %v2214_v52, %s2283_s16  ;;  %v2218_v60 = vpop.eup %2217  ;;  %v955_v55 = vld [vmem:[%s2662_s24 + $0x18] sm:$0xff] }
 0x1d5   : > { %2227 = vpow2.f32 %v984_v54  ;;  %v2551_v59 = vadd.f32 %v2460_v19, %v923_v58 }
 0x1d6   : > { %1582 = vst.msk [vmem:[%s2466_s14 + $0x58] sm:$0xff] %vm1105_vm2, %v2546_v57  ;;  %2229 = vpow2.f32 %v986_v56  ;;  %v990_v0 = vmul.f32 1.442695, %v2546_v57  ;;  %2193 = vmatpush3.bf16.msra.mxu1 %v2190_v40  ;;  %v956_v56 = vld [vmem:[%s2662_s24 + $0x20] sm:$0xff]  ;;  %v967_v40 = vld [vmem:[%s2662_s24 + $0x78] sm:$0xff] }
 0x1d7   : > { %v2220_v61 = vpop.eup %2219  ;;  %v988_v62 = vmul.f32 1.442695, %v2551_v59  ;;  %1581 = vst.msk [vmem:[%s2466_s14 + $0x50] sm:$0xff] %vm1105_vm2, %v2551_v59  ;;  %v2078_v63 = vpop.f32.mrb[10].mxu1 }
 0x1d8   : > { %v2562_v1 = vadd.f32 %v2078_v63, %v2460_v19  ;;  %v933_v2 = vpop.f32.mrb[11].mxu1  ;;  %1022 = vrot.lane.b32.xlu1 %v2218_v60, %s2283_s16  ;;  %1024 = vrot.lane.b32.xlu0 %v2220_v61, %s2283_s16  ;;  %v2222_v4 = vpop.eup %2221 }
 0x1d9   : > { %2231 = vpow2.f32 %v988_v62  ;;  %v2567_v3 = vadd.f32 %v2460_v19, %v933_v2 }
 0x1da   : > { %1584 = vst.msk [vmem:[%s2466_s14 + $0x68] sm:$0xff] %vm1105_vm2, %v2562_v1  ;;  %2233 = vpow2.f32 %v990_v0  ;;  %v994_v8 = vmul.f32 1.442695, %v2562_v1  ;;  %v957_v0 = vld [vmem:[%s2662_s24 + $0x28] sm:$0xff] }
 0x1db   : > { %v2224_v5 = vpop.eup %2223  ;;  %v992_v6 = vmul.f32 1.442695, %v2567_v3  ;;  %1583 = vst.msk [vmem:[%s2466_s14 + $0x60] sm:$0xff] %vm1105_vm2, %v2567_v3  ;;  %v2081_v7 = vpop.f32.mrb[12].mxu1 }
 0x1dc   : > { %v2578_v9 = vadd.f32 %v2081_v7, %v2460_v19  ;;  %v943_v10 = vpop.f32.mrb[13].mxu1  ;;  %1026 = vrot.lane.b32.xlu1 %v2222_v4, %s2283_s16  ;;  %1028 = vrot.lane.b32.xlu0 %v2224_v5, %s2283_s16  ;;  %v2226_v12 = vpop.eup %2225 }
 0x1dd   : > { %2235 = vpow2.f32 %v992_v6  ;;  %v2583_v11 = vadd.f32 %v2460_v19, %v943_v10 }
 0x1de   : > { %1586 = vst.msk [vmem:[%s2466_s14 + $0x78] sm:$0xff] %vm1105_vm2, %v2578_v9  ;;  %2237 = vpow2.f32 %v994_v8  ;;  %v998_v15 = vmul.f32 1.442695, %v2578_v9  ;;  %v959_v8 = vld [vmem:[%s2662_s24 + $0x38] sm:$0xff] }
 0x1df   : > { %v2228_v13 = vpop.eup %2227  ;;  %v996_v14 = vmul.f32 1.442695, %v2583_v11  ;;  %1585 = vst.msk [vmem:[%s2466_s14 + $0x70] sm:$0xff] %vm1105_vm2, %v2583_v11  ;;  %s2742_s14 = scalar_lea.vmem %s2882_s13, %s2386_s28 }
 0x1e0   : > { %1030 = vrot.lane.b32.xlu1 %v2226_v12, %s2283_s16  ;;  %1032 = vrot.lane.b32.xlu0 %v2228_v13, %s2283_s16  ;;  %v2230_v16 = vpop.eup %2229 }
 0x1e1   : > { %2239 = vpow2.f32 %v996_v14 }
 0x1e2   : > { %2241 = vpow2.f32 %v998_v15 }
 0x1e3   : > { %v2232_v17 = vpop.eup %2231 }
 0x1e4   : > { %1034 = vrot.lane.b32.xlu1 %v2230_v16, %s2283_s16  ;;  %1036 = vrot.lane.b32.xlu0 %v2232_v17, %s2283_s16  ;;  %v2234_v18 = vpop.eup %2233  ;;  %v961_v16 = vld [vmem:[%s2662_s24 + $0x48] sm:$0xff] }
 0x1e7   : > { %v2236_v19 = vpop.eup %2235 }
 0x1e8   : > { %1038 = vrot.lane.b32.xlu1 %v2234_v18, %s2283_s16  ;;  %1040 = vrot.lane.b32.xlu0 %v2236_v19, %s2283_s16  ;;  %v2238_v20 = vpop.eup %2237 }
 0x1eb   : > { %v2240_v22 = vpop.eup %2239 }
 0x1ec   : > { %1042 = vrot.lane.b32.xlu1 %v2238_v20, %s2283_s16  ;;  %1044 = vrot.lane.b32.xlu0 %v2240_v22, %s2283_s16  ;;  %v2242_v24 = vpop.eup %2241 }
 0x1f0   : > { %1046 = vrot.lane.b32.xlu1 %v2242_v24, %s2283_s16  ;;  %1603 = vrot.lane.b32.xlu0 %v2472_v23, %s2283_s16  ;;  %v963_v24 = vld [vmem:[%s2662_s24 + $0x58] sm:$0xff] }
 0x1f4   : > { %1605 = vrot.lane.b32.xlu1 %v2469_v21, %s2283_s16  ;;  %1607 = vrot.lane.b32.xlu0 %v2492_v31, %s2283_s16 }
 0x1f8   : > { %1609 = vrot.lane.b32.xlu1 %v2483_v27, %s2283_s16  ;;  %1611 = vrot.lane.b32.xlu0 %v2506_v38, %s2283_s16 }
 0x1fc   : > { %1613 = vrot.lane.b32.xlu1 %v2503_v36, %s2283_s16  ;;  %1615 = vrot.lane.b32.xlu0 %v2520_v44, %s2283_s16 }
 0x200   : > { %1617 = vrot.lane.b32.xlu1 %v2517_v42, %s2283_s16  ;;  %1619 = vrot.lane.b32.xlu0 %v2535_v51, %s2283_s16 }
 0x204   : > { %1621 = vrot.lane.b32.xlu1 %v2531_v49, %s2283_s16  ;;  %1623 = vrot.lane.b32.xlu0 %v2551_v59, %s2283_s16 }
 0x208   : > { %1625 = vrot.lane.b32.xlu1 %v2546_v57, %s2283_s16  ;;  %1627 = vrot.lane.b32.xlu0 %v2567_v3, %s2283_s16 }
 0x20c   : > { %1629 = vrot.lane.b32.xlu1 %v2562_v1, %s2283_s16  ;;  %1631 = vrot.lane.b32.xlu0 %v2583_v11, %s2283_s16 }
 0x210   : > { %1633 = vrot.lane.b32.xlu1 %v2578_v9, %s2283_s16 }
 0x242   : > { %v1017_v43 = vpop.permute.xlu0 %1016 }
 0x243   : > { %v1064_v45 = vmul.f32 %v1017_v43, %v952_v41 }
 0x245   : > { %v1080_v48 = vadd.f32 %v1064_v45, %v2472_v23 }
 0x246   : > { %v1021_v50 = vpop.permute.xlu1 %1020  ;;  %v1019_v52 = vpop.permute.xlu0 %1018 }
 0x247   : > { %1539 = vst.msk [vmem:[%s2669_s29] sm:$0xff] %vm1105_vm2, %v1080_v48  ;;  %v1066_v53 = vmul.f32 %v1021_v50, %v954_v46  ;;  %v1065_v54 = vmul.f32 %v1019_v52, %v953_v47  ;;  %2086 = vmatprep.mubr.msk.f32.mxu0 %vm1105_vm2, %v1080_v48 }
 0x249   : > { %v1082_v58 = vadd.f32 %v1066_v53, %v2492_v31  ;;  %v1081_v60 = vadd.f32 %v1065_v54, %v2469_v21  ;;  %v958_v31 = vld [vmem:[%s2662_s24 + $0x30] sm:$0xff] }
 0x24a   : > { %v1023_v61 = vpop.permute.xlu1 %1022  ;;  %v1025_v23 = vpop.permute.xlu0 %1024 }
 0x24b   : > { %1541 = vst.msk [vmem:[%s2669_s29 + $0x10] sm:$0xff] %vm1105_vm2, %v1082_v58  ;;  %1540 = vst.msk [vmem:[%s2669_s29 + $0x8] sm:$0xff] %vm1105_vm2, %v1081_v60  ;;  %v1067_v62 = vmul.f32 %v1023_v61, %v955_v55  ;;  %v1068_v63 = vmul.f32 %v1025_v23, %v956_v56  ;;  %2087 = vmatmul.mubr.msk.f32.vlgmr.msra.gmra.mrb[18].mxu0 %vm1105_vm2, %v1081_v60 }
 0x24c   : > { %2089 = vmatprep.mubr.msk.f32.mxu0 %vm1105_vm2, %v1082_v58 }
 0x24d   : > { %v1083_v2 = vadd.f32 %v1067_v62, %v2483_v27  ;;  %v1084_v21 = vadd.f32 %v1068_v63, %v2506_v38  ;;  %v960_v27 = vld [vmem:[%s2662_s24 + $0x40] sm:$0xff] }
 0x24e   : > { %v1027_v4 = vpop.permute.xlu1 %1026  ;;  %v1029_v5 = vpop.permute.xlu0 %1028  ;;  %v1888_v62 = vld [vmem:[%s2876_s7] ss:$0 sm:$0xff] }
 0x24f   : > { %1542 = vst.msk [vmem:[%s2669_s29 + $0x18] sm:$0xff] %vm1105_vm2, %v1083_v2  ;;  %1543 = vst.msk [vmem:[%s2669_s29 + $0x20] sm:$0xff] %vm1105_vm2, %v1084_v21  ;;  %v1069_v6 = vmul.f32 %v1027_v4, %v957_v0  ;;  %v1070_v7 = vmul.f32 %v1029_v5, %v958_v31  ;;  %2090 = vmatmul.mubr.msk.f32.gmra.mrb[20].mxu0 %vm1105_vm2, %v1083_v2 }
 0x250   : > { %2092 = vmatprep.mubr.msk.f32.mxu0 %vm1105_vm2, %v1084_v21 }
 0x251   : > { %v1085_v10 = vadd.f32 %v1069_v6, %v2503_v36  ;;  %v1086_v38 = vadd.f32 %v1070_v7, %v2520_v44  ;;  %v962_v36 = vld [vmem:[%s2662_s24 + $0x50] sm:$0xff] }
 0x252   : > { %v1031_v12 = vpop.permute.xlu1 %1030  ;;  %v1033_v13 = vpop.permute.xlu0 %1032 }
 0x253   : > { %1544 = vst.msk [vmem:[%s2669_s29 + $0x28] sm:$0xff] %vm1105_vm2, %v1085_v10  ;;  %1545 = vst.msk [vmem:[%s2669_s29 + $0x30] sm:$0xff] %vm1105_vm2, %v1086_v38  ;;  %v1071_v14 = vmul.f32 %v1031_v12, %v959_v8  ;;  %v1072_v15 = vmul.f32 %v1033_v13, %v960_v27  ;;  %2093 = vmatmul.mubr.msk.f32.gmra.mrb[22].mxu0 %vm1105_vm2, %v1085_v10 }
 0x254   : > { %2095 = vmatprep.mubr.msk.f32.mxu0 %vm1105_vm2, %v1086_v38 }
 0x255   : > { %v1087_v17 = vadd.f32 %v1071_v14, %v2517_v42  ;;  %v1088_v44 = vadd.f32 %v1072_v15, %v2535_v51  ;;  %v964_v42 = vld [vmem:[%s2662_s24 + $0x60] sm:$0xff] }
 0x256   : > { %v1035_v18 = vpop.permute.xlu1 %1034  ;;  %v1037_v19 = vpop.permute.xlu0 %1036 }
 0x257   : > { %1546 = vst.msk [vmem:[%s2669_s29 + $0x38] sm:$0xff] %vm1105_vm2, %v1087_v17  ;;  %1547 = vst.msk [vmem:[%s2669_s29 + $0x40] sm:$0xff] %vm1105_vm2, %v1088_v44  ;;  %v1073_v20 = vmul.f32 %v1035_v18, %v961_v16  ;;  %v1074_v22 = vmul.f32 %v1037_v19, %v962_v36  ;;  %2096 = vmatmul.mubr.msk.f32.gmra.mrb[24].mxu0 %vm1105_vm2, %v1087_v17 }
 0x258   : > { %2098 = vmatprep.mubr.msk.f32.mxu0 %vm1105_vm2, %v1088_v44 }
 0x259   : > { %v1089_v25 = vadd.f32 %v1073_v20, %v2531_v49  ;;  %v1090_v51 = vadd.f32 %v1074_v22, %v2551_v59  ;;  %v966_v49 = vld [vmem:[%s2662_s24 + $0x70] sm:$0xff] }
 0x25a   : > { %v1039_v26 = vpop.permute.xlu1 %1038  ;;  %v1041_v28 = vpop.permute.xlu0 %1040 }
 0x25b   : > { %1548 = vst.msk [vmem:[%s2669_s29 + $0x48] sm:$0xff] %vm1105_vm2, %v1089_v25  ;;  %1549 = vst.msk [vmem:[%s2669_s29 + $0x50] sm:$0xff] %vm1105_vm2, %v1090_v51  ;;  %v1075_v29 = vmul.f32 %v1039_v26, %v963_v24  ;;  %v1076_v30 = vmul.f32 %v1041_v28, %v964_v42  ;;  %2099 = vmatmul.mubr.msk.f32.gmra.mrb[26].mxu0 %vm1105_vm2, %v1089_v25 }
 0x25c   : > { %2101 = vmatprep.mubr.msk.f32.mxu0 %vm1105_vm2, %v1090_v51 }
 0x25d   : > { %v1091_v33 = vadd.f32 %v1075_v29, %v2546_v57  ;;  %v1092_v59 = vadd.f32 %v1076_v30, %v2567_v3 }
 0x25e   : > { %v1043_v34 = vpop.permute.xlu1 %1042  ;;  %v1045_v35 = vpop.permute.xlu0 %1044 }
 0x25f   : > { %1550 = vst.msk [vmem:[%s2669_s29 + $0x58] sm:$0xff] %vm1105_vm2, %v1091_v33  ;;  %1551 = vst.msk [vmem:[%s2669_s29 + $0x60] sm:$0xff] %vm1105_vm2, %v1092_v59  ;;  %v1077_v37 = vmul.f32 %v1043_v34, %v965_v32  ;;  %v1078_v39 = vmul.f32 %v1045_v35, %v966_v49  ;;  %2102 = vmatmul.mubr.msk.f32.gmra.mrb[28].mxu0 %vm1105_vm2, %v1091_v33 }
 0x260   : > { %2104 = vmatprep.mubr.msk.f32.mxu0 %vm1105_vm2, %v1092_v59 }
 0x261   : > { %v1093_v57 = vadd.f32 %v1077_v37, %v2562_v1  ;;  %v1094_v3 = vadd.f32 %v1078_v39, %v2583_v11 }
 0x262   : > { %v1047_v41 = vpop.permute.xlu1 %1046  ;;  %v1604_v43 = vpop.permute.xlu0 %1603 }
 0x263   : > { %1552 = vst.msk [vmem:[%s2669_s29 + $0x68] sm:$0xff] %vm1105_vm2, %v1093_v57  ;;  %1553 = vst.msk [vmem:[%s2669_s29 + $0x70] sm:$0xff] %vm1105_vm2, %v1094_v3  ;;  %v1079_v45 = vmul.f32 %v1047_v41, %v967_v40  ;;  %2105 = vmatmul.mubr.msk.f32.gmra.mrb[30].mxu0 %vm1105_vm2, %v1093_v57 }
 0x264   : > { %1651 = vst.msk [vmem:[%s2742_s14] sm:$0xff] %vm1105_vm2, %v1604_v43  ;;  %2107 = vmatprep.mubr.msk.f32.mxu0 %vm1105_vm2, %v1094_v3 }
 0x265   : > { %v1095_v1 = vadd.f32 %v1079_v45, %v2578_v9 }
 0x266   : > { %v1606_v11 = vpop.permute.xlu1 %1605  ;;  %v1608_v46 = vpop.permute.xlu0 %1607 }
 0x267   : > { %1554 = vst.msk [vmem:[%s2669_s29 + $0x78] sm:$0xff] %vm1105_vm2, %v1095_v1  ;;  %1652 = vst.msk [vmem:[%s2742_s14 + $0x8] sm:$0xff] %vm1105_vm2, %v1606_v11  ;;  %2108 = vmatmul.mubr.msk.f32.gmra.mrb[32].mxu0 %vm1105_vm2, %v1095_v1  ;;  %v2810_v11 = vld [vmem:[%s2878_s9] ss:$0 sm:$0xff] }
 0x268   : > { %1653 = vst.msk [vmem:[%s2742_s14 + $0x10] sm:$0xff] %vm1105_vm2, %v1608_v46 }
 0x26a   : > { %v1610_v47 = vpop.permute.xlu1 %1609  ;;  %v1612_v48 = vpop.permute.xlu0 %1611 }
 0x26b   : > { %1654 = vst.msk [vmem:[%s2742_s14 + $0x18] sm:$0xff] %vm1105_vm2, %v1610_v47  ;;  %1655 = vst.msk [vmem:[%s2742_s14 + $0x20] sm:$0xff] %vm1105_vm2, %v1612_v48 }
 0x26e   : > { %v1614_v9 = vpop.permute.xlu1 %1613  ;;  %v1616_v50 = vpop.permute.xlu0 %1615 }
 0x26f   : > { %1656 = vst.msk [vmem:[%s2742_s14 + $0x28] sm:$0xff] %vm1105_vm2, %v1614_v9  ;;  %1657 = vst.msk [vmem:[%s2742_s14 + $0x30] sm:$0xff] %vm1105_vm2, %v1616_v50 }
 0x272   : > { %v1618_v52 = vpop.permute.xlu1 %1617  ;;  %v1620_v53 = vpop.permute.xlu0 %1619 }
 0x273   : > { %1658 = vst.msk [vmem:[%s2742_s14 + $0x38] sm:$0xff] %vm1105_vm2, %v1618_v52  ;;  %1659 = vst.msk [vmem:[%s2742_s14 + $0x40] sm:$0xff] %vm1105_vm2, %v1620_v53 }
 0x276   : > { %v1622_v54 = vpop.permute.xlu1 %1621  ;;  %v1624_v55 = vpop.permute.xlu0 %1623 }
 0x277   : > { %1660 = vst.msk [vmem:[%s2742_s14 + $0x48] sm:$0xff] %vm1105_vm2, %v1622_v54  ;;  %1661 = vst.msk [vmem:[%s2742_s14 + $0x50] sm:$0xff] %vm1105_vm2, %v1624_v55 }
 0x27a   : > { %v1626_v56 = vpop.permute.xlu1 %1625  ;;  %v1628_v58 = vpop.permute.xlu0 %1627 }
 0x27b   : > { %1662 = vst.msk [vmem:[%s2742_s14 + $0x58] sm:$0xff] %vm1105_vm2, %v1626_v56  ;;  %1663 = vst.msk [vmem:[%s2742_s14 + $0x60] sm:$0xff] %vm1105_vm2, %v1628_v58 }
 0x27e   : > { %v1630_v60 = vpop.permute.xlu1 %1629  ;;  %v1632_v61 = vpop.permute.xlu0 %1631 }
 0x27f   : > { %1664 = vst.msk [vmem:[%s2742_s14 + $0x68] sm:$0xff] %vm1105_vm2, %v1630_v60  ;;  %1665 = vst.msk [vmem:[%s2742_s14 + $0x70] sm:$0xff] %vm1105_vm2, %v1632_v61 }
 0x282   : > { %v1634_v23 = vpop.permute.xlu1 %1633 }
 0x283   : > { %1666 = vst.msk [vmem:[%s2742_s14 + $0x78] sm:$0xff] %vm1105_vm2, %v1634_v23 }
 0x31e   : > { %v2088_v63 = vpop.f32.mrb[18].mxu0 }
 0x31f   : > { %v1226_v0 = vadd.f32 %v2088_v63, %v1888_v62  ;;  %v1220_v31 = vpop.f32.mrb[19].mxu0 }
 0x320   : > { %v1221_v2 = vadd.f32 %v1888_v62, %v1220_v31 }
 0x321   : > { %v1300_v5 = vmax.f32 %v1226_v0, 0.0 }
 0x322   : > { %v1299_v21 = vmax.f32 %v1221_v2, 0.0  ;;  %v2091_v4 = vpop.f32.mrb[20].mxu0 }
 0x323   : > { %v1236_v6 = vadd.f32 %v2091_v4, %v1888_v62  ;;  %v1230_v7 = vpop.f32.mrb[21].mxu0 }
 0x324   : > { %v1231_v8 = vadd.f32 %v1888_v62, %v1230_v7  ;;  %2126 = vmatprep.mubr.msk.f32.mxu1 %vm758_vm1, %v1299_v21 }
 0x325   : > { %2127 = vmatmul.mubr.msk.f32.vlgmr.msra.gmra.mrb[14].mxu1 %vm758_vm1, %v1300_v5  ;;  %v1302_v38 = vmax.f32 %v1236_v6, 0.0 }
 0x326   : > { %v1301_v27 = vmax.f32 %v1231_v8, 0.0  ;;  %v2094_v10 = vpop.f32.mrb[22].mxu0 }
 0x327   : > { %v1246_v12 = vadd.f32 %v2094_v10, %v1888_v62  ;;  %v1240_v13 = vpop.f32.mrb[23].mxu0 }
 0x328   : > { %v1241_v14 = vadd.f32 %v1888_v62, %v1240_v13  ;;  %2129 = vmatprep.mubr.msk.f32.mxu1 %vm758_vm1, %v1301_v27 }
 0x329   : > { %2130 = vmatmul.mubr.msk.f32.gmra.mrb[16].mxu1 %vm758_vm1, %v1302_v38  ;;  %v1304_v36 = vmax.f32 %v1246_v12, 0.0 }
 0x32a   : > { %v1303_v15 = vmax.f32 %v1241_v14, 0.0  ;;  %v2097_v16 = vpop.f32.mrb[24].mxu0 }
 0x32b   : > { %v1256_v17 = vadd.f32 %v2097_v16, %v1888_v62  ;;  %v1250_v44 = vpop.f32.mrb[25].mxu0 }
 0x32c   : > { %v1251_v18 = vadd.f32 %v1888_v62, %v1250_v44  ;;  %2132 = vmatprep.mubr.msk.f32.mxu1 %vm758_vm1, %v1303_v15 }
 0x32d   : > { %2133 = vmatmul.mubr.msk.f32.gmra.mrb[18].mxu1 %vm758_vm1, %v1304_v36  ;;  %v1306_v22 = vmax.f32 %v1256_v17, 0.0 }
 0x32e   : > { %v1305_v19 = vmax.f32 %v1251_v18, 0.0  ;;  %v2100_v20 = vpop.f32.mrb[26].mxu0 }
 0x32f   : > { %v1266_v24 = vadd.f32 %v2100_v20, %v1888_v62  ;;  %v1260_v42 = vpop.f32.mrb[27].mxu0 }
 0x330   : > { %v1261_v25 = vadd.f32 %v1888_v62, %v1260_v42  ;;  %2135 = vmatprep.mubr.msk.f32.mxu1 %vm758_vm1, %v1305_v19 }
 0x331   : > { %2136 = vmatmul.mubr.msk.f32.gmra.mrb[20].mxu1 %vm758_vm1, %v1306_v22  ;;  %v1308_v28 = vmax.f32 %v1266_v24, 0.0 }
 0x332   : > { %v1307_v51 = vmax.f32 %v1261_v25, 0.0  ;;  %v2103_v26 = vpop.f32.mrb[28].mxu0 }
 0x333   : > { %v1276_v29 = vadd.f32 %v2103_v26, %v1888_v62  ;;  %v1270_v30 = vpop.f32.mrb[29].mxu0 }
 0x334   : > { %v1271_v32 = vadd.f32 %v1888_v62, %v1270_v30  ;;  %2138 = vmatprep.mubr.msk.f32.mxu1 %vm758_vm1, %v1307_v51 }
 0x335   : > { %2139 = vmatmul.mubr.msk.f32.gmra.mrb[22].mxu1 %vm758_vm1, %v1308_v28  ;;  %v1310_v59 = vmax.f32 %v1276_v29, 0.0 }
 0x336   : > { %v1309_v49 = vmax.f32 %v1271_v32, 0.0  ;;  %v2106_v33 = vpop.f32.mrb[30].mxu0 }
 0x337   : > { %v1286_v34 = vadd.f32 %v2106_v33, %v1888_v62  ;;  %v1280_v35 = vpop.f32.mrb[31].mxu0 }
 0x338   : > { %v1281_v37 = vadd.f32 %v1888_v62, %v1280_v35  ;;  %2141 = vmatprep.mubr.msk.f32.mxu1 %vm758_vm1, %v1309_v49 }
 0x339   : > { %2142 = vmatmul.mubr.msk.f32.gmra.mrb[24].mxu1 %vm758_vm1, %v1310_v59  ;;  %v1312_v57 = vmax.f32 %v1286_v34, 0.0 }
 0x33a   : > { %v1311_v39 = vmax.f32 %v1281_v37, 0.0  ;;  %v2109_v40 = vpop.f32.mrb[32].mxu0 }
 0x33b   : > { %v1296_v3 = vadd.f32 %v2109_v40, %v1888_v62  ;;  %v1290_v41 = vpop.f32.mrb[33].mxu0 }
 0x33c   : > { %v1291_v43 = vadd.f32 %v1888_v62, %v1290_v41  ;;  %2144 = vmatprep.mubr.msk.f32.mxu1 %vm758_vm1, %v1311_v39 }
 0x33d   : > { %2145 = vmatmul.mubr.msk.f32.gmra.mrb[26].mxu1 %vm758_vm1, %v1312_v57  ;;  %v1314_v1 = vmax.f32 %v1296_v3, 0.0 }
 0x33e   : > { %v1313_v45 = vmax.f32 %v1291_v43, 0.0 }
 0x340   : > { %2147 = vmatprep.mubr.msk.f32.mxu1 %vm758_vm1, %v1313_v45 }
 0x341   : > { %2148 = vmatmul.mubr.msk.f32.gmra.mrb[28].mxu1 %vm758_vm1, %v1314_v1 }
 0x3f8   : > { %v2128_v46 = vpop.f32.mrb[14].mxu1 }
 0x3f9   : > { %v1450_v47 = vadd.f32 %v2128_v46, %v2810_v11  ;;  %v1444_v48 = vpop.f32.mrb[15].mxu1 }
 0x3fa   : > { %v1445_v9 = vadd.f32 %v2810_v11, %v1444_v48 }
 0x3fb   : > { %2243 = vtanh.f32 %v1450_v47 }
 0x3fc   : > { %2245 = vtanh.f32 %v1445_v9  ;;  %v2131_v50 = vpop.f32.mrb[16].mxu1 }
 0x3fd   : > { %v1460_v52 = vadd.f32 %v2131_v50, %v2810_v11  ;;  %v1454_v53 = vpop.f32.mrb[17].mxu1 }
 0x3fe   : > { %v1455_v54 = vadd.f32 %v2810_v11, %v1454_v53 }
 0x3ff   : > { %2247 = vtanh.f32 %v1460_v52 }
 0x400   : > { %2249 = vtanh.f32 %v1455_v54  ;;  %v2134_v55 = vpop.f32.mrb[18].mxu1 }
 0x401   : > { %v1470_v56 = vadd.f32 %v2134_v55, %v2810_v11  ;;  %v1464_v58 = vpop.f32.mrb[19].mxu1 }
 0x402   : > { %v1465_v60 = vadd.f32 %v2810_v11, %v1464_v58 }
 0x403   : > { %2251 = vtanh.f32 %v1470_v56 }
 0x404   : > { %2253 = vtanh.f32 %v1465_v60  ;;  %v2137_v61 = vpop.f32.mrb[20].mxu1 }
 0x405   : > { %v2244_v23 = vpop.eup %2243  ;;  %v1480_v62 = vadd.f32 %v2137_v61, %v2810_v11  ;;  %v1474_v63 = vpop.f32.mrb[21].mxu1 }
 0x406   : > { %v2246_v0 = vpop.eup %2245  ;;  %1556 = vst.msk [vmem:[%s2822_s22 + $0x8] sm:$0xff] %vm533_vm0, %v2244_v23  ;;  %v1475_v31 = vadd.f32 %v2810_v11, %v1474_v63 }
 0x407   : > { %1555 = vst.msk [vmem:[%s2822_s22] sm:$0xff] %vm533_vm0, %v2246_v0  ;;  %2255 = vtanh.f32 %v1480_v62 }
 0x408   : > { %2257 = vtanh.f32 %v1475_v31  ;;  %v2140_v2 = vpop.f32.mrb[22].mxu1 }
 0x409   : > { %v2248_v21 = vpop.eup %2247  ;;  %v1490_v4 = vadd.f32 %v2140_v2, %v2810_v11  ;;  %v1484_v5 = vpop.f32.mrb[23].mxu1 }
 0x40a   : > { %v2250_v6 = vpop.eup %2249  ;;  %1558 = vst.msk [vmem:[%s2822_s22 + $0x18] sm:$0xff] %vm533_vm0, %v2248_v21  ;;  %v1485_v7 = vadd.f32 %v2810_v11, %v1484_v5 }
 0x40b   : > { %1557 = vst.msk [vmem:[%s2822_s22 + $0x10] sm:$0xff] %vm533_vm0, %v2250_v6  ;;  %2259 = vtanh.f32 %v1490_v4 }
 0x40c   : > { %2261 = vtanh.f32 %v1485_v7  ;;  %v2143_v8 = vpop.f32.mrb[24].mxu1 }
 0x40d   : > { %v2252_v27 = vpop.eup %2251  ;;  %v1500_v10 = vadd.f32 %v2143_v8, %v2810_v11  ;;  %v1494_v38 = vpop.f32.mrb[25].mxu1 }
 0x40e   : > { %v2254_v12 = vpop.eup %2253  ;;  %1560 = vst.msk [vmem:[%s2822_s22 + $0x28] sm:$0xff] %vm533_vm0, %v2252_v27  ;;  %v1495_v13 = vadd.f32 %v2810_v11, %v1494_v38 }
 0x40f   : > { %1559 = vst.msk [vmem:[%s2822_s22 + $0x20] sm:$0xff] %vm533_vm0, %v2254_v12  ;;  %2263 = vtanh.f32 %v1500_v10 }
 0x410   : > { %2265 = vtanh.f32 %v1495_v13  ;;  %v2146_v14 = vpop.f32.mrb[26].mxu1 }
 0x411   : > { %v2256_v15 = vpop.eup %2255  ;;  %v1510_v16 = vadd.f32 %v2146_v14, %v2810_v11  ;;  %v1504_v36 = vpop.f32.mrb[27].mxu1 }
 0x412   : > { %v2258_v17 = vpop.eup %2257  ;;  %1562 = vst.msk [vmem:[%s2822_s22 + $0x38] sm:$0xff] %vm533_vm0, %v2256_v15  ;;  %v1505_v44 = vadd.f32 %v2810_v11, %v1504_v36 }
 0x413   : > { %1561 = vst.msk [vmem:[%s2822_s22 + $0x30] sm:$0xff] %vm533_vm0, %v2258_v17  ;;  %2267 = vtanh.f32 %v1510_v16 }
 0x414   : > { %2269 = vtanh.f32 %v1505_v44  ;;  %v2149_v18 = vpop.f32.mrb[28].mxu1 }
 0x415   : > { %v2260_v19 = vpop.eup %2259  ;;  %v1520_v20 = vadd.f32 %v2149_v18, %v2810_v11  ;;  %v1514_v22 = vpop.f32.mrb[29].mxu1 }
 0x416   : > { %v2262_v24 = vpop.eup %2261  ;;  %1564 = vst.msk [vmem:[%s2822_s22 + $0x48] sm:$0xff] %vm533_vm0, %v2260_v19  ;;  %v1515_v42 = vadd.f32 %v2810_v11, %v1514_v22 }
 0x417   : > { %1563 = vst.msk [vmem:[%s2822_s22 + $0x40] sm:$0xff] %vm533_vm0, %v2262_v24  ;;  %2271 = vtanh.f32 %v1520_v20 }
 0x418   : > { %2273 = vtanh.f32 %v1515_v42 }
 0x419   : > { %v2264_v25 = vpop.eup %2263 }
 0x41a   : > { %v2266_v51 = vpop.eup %2265  ;;  %1566 = vst.msk [vmem:[%s2822_s22 + $0x58] sm:$0xff] %vm533_vm0, %v2264_v25 }
 0x41b   : > { %1565 = vst.msk [vmem:[%s2822_s22 + $0x50] sm:$0xff] %vm533_vm0, %v2266_v51 }
 0x41d   : > { %v2268_v26 = vpop.eup %2267 }
 0x41e   : > { %v2270_v28 = vpop.eup %2269  ;;  %1568 = vst.msk [vmem:[%s2822_s22 + $0x68] sm:$0xff] %vm533_vm0, %v2268_v26 }
 0x41f   : > { %1567 = vst.msk [vmem:[%s2822_s22 + $0x60] sm:$0xff] %vm533_vm0, %v2270_v28 }
 0x421   : > { %v2272_v29 = vpop.eup %2271 }
 0x422   : > { %v2274_v30 = vpop.eup %2273  ;;  %1570 = vst.msk [vmem:[%s2822_s22 + $0x78] sm:$0xff] %vm533_vm0, %v2272_v29 }
 0x423   : > { %1569 = vst.msk [vmem:[%s2822_s22 + $0x70] sm:$0xff] %vm533_vm0, %v2274_v30 }
 0x424 PF: > { %s24_s25 = sadd.s32 1, %s2281_s25  }
 0x425   : > { %p21_p4 = scmp.ge.s32.totalorder %s24_s25, 6  }
 0x427   :  { %23 = sbr.rel (!%p21_p4) target bundleno = 1 (0x1), region = 129 }

</bundles_post_ra>
